<compile_context>
chip_gen: v5e
topology: v5e:2x2
jax: 0.10.0
libtpu: 0.0.40
codegen_flags: <defaults>
</compile_context>

<pallas_src>
import functools

import jax
import jax.numpy as jnp
from jax import lax
from jax.experimental import pallas as pl
from jax.experimental.pallas import tpu as pltpu


# ---------------- config (small, consistent with the module) ----------------
BATCH = 2
SEQ = 8
INTERMEDIATE_SIZE = 64     # config.intermediate_size
QUERY_SIZE = 32            # config.query_size
LAYER_NORM_EPS = 1e-12     # config.layer_norm_eps
HIDDEN_DROPOUT_PROB = 0.1  # config.hidden_dropout_prob (identity at inference)


# ------------------------------- kernel -------------------------------------
def _drn_kernel(h_ref, w_ref, res_ref, p_ref, o_ref, *, eps):
    # h_ref:   (tm, K)  hidden_states rows (flattened batch*seq)
    # w_ref:   (K, N)   dense weight, pre-transposed to [in, out]
    # res_ref: (tm, N)  residual (input_tensor rows)
    # p_ref:   (3, N)   fused params: row 0 = bias, row 1 = gamma, row 2 = beta
    # o_ref:   (tm, N)  output rows

    # Dense: h @ W on the MXU, f32 accumulation, no in-kernel weight transpose.
    x = jnp.dot(h_ref[...], w_ref[...], preferred_element_type=jnp.float32)
    x = x + p_ref[0:1, :]            # bias

    # Dropout is identity at inference.
    x = x + res_ref[...]             # residual add

    # LayerNorm over the feature (lane) dim; all math in f32, rsqrt on the EUP.
    mean = jnp.mean(x, axis=-1, keepdims=True)
    xc = x - mean
    var = jnp.mean(xc * xc, axis=-1, keepdims=True)
    inv = lax.rsqrt(var + eps)
    y = xc * inv * p_ref[1:2, :] + p_ref[2:3, :]

    o_ref[...] = y.astype(o_ref.dtype)


# --------------------------- one-time param prep -----------------------------
def make_drn_params(w, b, gamma, beta):
    """One-time (model load / trace-time) prep.

    * Transpose torch-layout weight [N, K] -> [K, N] so the contraction dim is
      on sublanes for the RHS (no in-kernel XLU transpose before the MXU).
    * Fuse bias/gamma/beta into a single (3, N) block -> one DMA descriptor,
      one padded VMEM tile, no per-call concat.
    """
    w_kn = jnp.asarray(w).T
    params = jnp.stack(
        [jnp.asarray(b), jnp.asarray(gamma), jnp.asarray(beta)], axis=0)
    return w_kn, params


# ------------------------------- wrapper -------------------------------------
def bert_drn(hidden_states, input_tensor, w_kn, params, *,
             eps=LAYER_NORM_EPS, row_tile=512):
    """hidden_states: [B, S, K]; input_tensor: [B, S, N];
    w_kn: [K, N] (pre-transposed); params: [3, N] (bias, gamma, beta)."""
    B, S, K = hidden_states.shape
    N = input_tensor.shape[-1]
    M = B * S

    h2d = hidden_states.reshape(M, K)
    r2d = input_tensor.reshape(M, N)

    # Row tiling: single block for small M (launch-bound regime); tile + shard
    # rows across TensorCores ("parallel") once M is big enough.
    if M > row_tile and M % row_tile == 0:
        tm = row_tile
    else:
        tm = M
    grid = (M // tm,)

    itemsize = jnp.dtype(hidden_states.dtype).itemsize
    bytes_accessed = (M * K + K * N + M * N + 3 * N + M * N) * itemsize
    cost = pl.CostEstimate(flops=2 * M * K * N,
                           bytes_accessed=bytes_accessed,
                           transcendentals=M)  # one rsqrt per row

    kernel = functools.partial(_drn_kernel, eps=eps)

    out2d = pl.pallas_call(
        kernel,
        out_shape=jax.ShapeDtypeStruct((M, N), hidden_states.dtype),
        grid_spec=pltpu.PrefetchScalarGridSpec(
            num_scalar_prefetch=0,
            grid=grid,
            in_specs=[
                pl.BlockSpec((tm, K), lambda i: (i, 0)),   # activations (row tile)
                pl.BlockSpec((K, N), lambda i: (0, 0)),    # weight (resident)
                pl.BlockSpec((tm, N), lambda i: (i, 0)),   # residual (row tile)
                pl.BlockSpec((3, N), lambda i: (0, 0)),    # fused params (resident)
            ],
            out_specs=pl.BlockSpec((tm, N), lambda i: (i, 0)),
        ),
        compiler_params=pltpu.CompilerParams(
            dimension_semantics=("parallel",)),
        cost_estimate=cost,
    )(h2d, w_kn, r2d, params)

    return out2d.reshape(B, S, N)


# ------------------------------- reference ----------------------------------
def bert_drn_ref(hidden_states, input_tensor, w, b, gamma, beta,
                 eps=LAYER_NORM_EPS):
    x = jnp.einsum("bsk,nk->bsn", hidden_states, w) + b
    x = x + input_tensor
    mean = jnp.mean(x, axis=-1, keepdims=True)
    var = jnp.mean((x - mean) ** 2, axis=-1, keepdims=True)
    return (x - mean) * lax.rsqrt(var + eps) * gamma + beta


# --------------------------------- main --------------------------------------
if __name__ == "__main__":
    key = jax.random.PRNGKey(0)
    k1, k2, k3, k4, k5, k6 = jax.random.split(key, 6)

    hidden_states = jax.random.normal(
        k1, (BATCH, SEQ, INTERMEDIATE_SIZE), jnp.float32)
    input_tensor = jax.random.normal(
        k2, (BATCH, SEQ, QUERY_SIZE), jnp.float32)

    # Deterministic parameter init (shapes from nn.Linear / nn.LayerNorm).
    w = 0.02 * jax.random.normal(
        k3, (QUERY_SIZE, INTERMEDIATE_SIZE), jnp.float32)   # torch layout [N, K]
    b = 0.01 * jax.random.normal(k4, (QUERY_SIZE,), jnp.float32)
    gamma = jnp.ones((QUERY_SIZE,), jnp.float32) + 0.05 * jax.random.normal(
        k5, (QUERY_SIZE,), jnp.float32)
    beta = 0.05 * jax.random.normal(k6, (QUERY_SIZE,), jnp.float32)

    # One-time prep (outside the per-call hot path).
    w_kn, params = make_drn_params(w, b, gamma, beta)
    w_kn = jax.block_until_ready(w_kn)
    params = jax.block_until_ready(params)

    out = bert_drn(hidden_states, input_tensor, w_kn, params)
    out = jax.block_until_ready(out)

    ref = bert_drn_ref(hidden_states, input_tensor, w, b, gamma, beta)
    assert out.shape == (BATCH, SEQ, QUERY_SIZE)
    assert jnp.allclose(out, ref, atol=1e-5, rtol=1e-5), \
        f"max err {jnp.max(jnp.abs(out - ref))}"

    print("KERNEL_OK")
</pallas_src>

<mosaic_0001>
module attributes {stable_mosaic.version = 11 : i64} {
  func.func @_drn_kernel(%arg0: i32, %arg1: memref<16x64xf32, #tpu.memory_space<vmem>>, %arg2: memref<64x32xf32, #tpu.memory_space<vmem>>, %arg3: memref<16x32xf32, #tpu.memory_space<vmem>>, %arg4: memref<3x32xf32, #tpu.memory_space<vmem>>, %arg5: memref<16x32xf32, #tpu.memory_space<vmem>>) attributes {dimension_semantics = [#tpu.dimension_semantics<parallel>], iteration_bounds = array<i64: 1>, scalar_prefetch = 0 : i64, scratch_operands = 0 : i64, tpu.core_type = #tpu.core_type<tc>, window_params = [{transform_indices = @transform_0, window_bounds = array<i64: 16, 64>}, {pipeline_mode = #tpu.pipeline_mode<synchronous>, transform_indices = @transform_1, window_bounds = array<i64: 64, 32>}, {transform_indices = @transform_2, window_bounds = array<i64: 16, 32>}, {pipeline_mode = #tpu.pipeline_mode<synchronous>, transform_indices = @transform_3, window_bounds = array<i64: 3, 32>}, {transform_indices = @transform_4, window_bounds = array<i64: 16, 32>}]} {
    %c0 = arith.constant 0 : index
    %c0_0 = arith.constant 0 : index
    %0 = vector.load %arg1[%c0, %c0_0] : memref<16x64xf32, #tpu.memory_space<vmem>>, vector<16x64xf32>
    %c0_1 = arith.constant 0 : index
    %c0_2 = arith.constant 0 : index
    %1 = vector.load %arg2[%c0_1, %c0_2] : memref<64x32xf32, #tpu.memory_space<vmem>>, vector<64x32xf32>
    %cst = arith.constant dense<0.000000e+00> : vector<16x32xf32>
    %2 = tpu.matmul %0, %1, %cst {dimension_numbers = #tpu.dot_dimension_numbers<[1], [0], [0], [1], [0, 0, 1, 1], [], []>} : vector<16x64xf32>, vector<64x32xf32>, vector<16x32xf32> -> vector<16x32xf32>
    %c0_3 = arith.constant 0 : index
    %c0_4 = arith.constant 0 : index
    %3 = vector.load %arg4[%c0_3, %c0_4] : memref<3x32xf32, #tpu.memory_space<vmem>>, vector<1x32xf32>
    %4 = vector.broadcast %3 : vector<1x32xf32> to vector<16x32xf32>
    %5 = arith.addf %2, %4 : vector<16x32xf32>
    %c0_5 = arith.constant 0 : index
    %c0_6 = arith.constant 0 : index
    %6 = vector.load %arg3[%c0_5, %c0_6] : memref<16x32xf32, #tpu.memory_space<vmem>>, vector<16x32xf32>
    %7 = arith.addf %5, %6 : vector<16x32xf32>
    %cst_7 = arith.constant dense<0.000000e+00> : vector<16xf32>
    %8 = vector.multi_reduction <add>, %7, %cst_7 [1] : vector<16x32xf32> to vector<16xf32>
    %9 = vector.shape_cast %8 : vector<16xf32> to vector<16x1xf32>
    %cst_8 = arith.constant 3.200000e+01 : f32
    %10 = vector.broadcast %cst_8 : f32 to vector<16x1xf32>
    %11 = arith.divf %9, %10 : vector<16x1xf32>
    %12 = vector.broadcast %11 : vector<16x1xf32> to vector<16x32xf32>
    %13 = arith.subf %7, %12 : vector<16x32xf32>
    %14 = arith.mulf %13, %13 : vector<16x32xf32>
    %cst_9 = arith.constant dense<0.000000e+00> : vector<16xf32>
    %15 = vector.multi_reduction <add>, %14, %cst_9 [1] : vector<16x32xf32> to vector<16xf32>
    %16 = vector.shape_cast %15 : vector<16xf32> to vector<16x1xf32>
    %cst_10 = arith.constant 3.200000e+01 : f32
    %17 = vector.broadcast %cst_10 : f32 to vector<16x1xf32>
    %18 = arith.divf %16, %17 : vector<16x1xf32>
    %cst_11 = arith.constant 9.99999996E-13 : f32
    %19 = vector.broadcast %cst_11 : f32 to vector<16x1xf32>
    %20 = arith.addf %18, %19 : vector<16x1xf32>
    %21 = math.rsqrt %20 : vector<16x1xf32>
    %22 = vector.broadcast %21 : vector<16x1xf32> to vector<16x32xf32>
    %23 = arith.mulf %13, %22 : vector<16x32xf32>
    %c1 = arith.constant 1 : index
    %c0_12 = arith.constant 0 : index
    %24 = vector.load %arg4[%c1, %c0_12] : memref<3x32xf32, #tpu.memory_space<vmem>>, vector<1x32xf32>
    %25 = vector.broadcast %24 : vector<1x32xf32> to vector<16x32xf32>
    %26 = arith.mulf %23, %25 : vector<16x32xf32>
    %c2 = arith.constant 2 : index
    %c0_13 = arith.constant 0 : index
    %27 = vector.load %arg4[%c2, %c0_13] : memref<3x32xf32, #tpu.memory_space<vmem>>, vector<1x32xf32>
    %28 = vector.broadcast %27 : vector<1x32xf32> to vector<16x32xf32>
    %29 = arith.addf %26, %28 : vector<16x32xf32>
    %c0_14 = arith.constant 0 : index
    %c0_15 = arith.constant 0 : index
    %30 = vector.load %arg5[%c0_14, %c0_15] : memref<16x32xf32, #tpu.memory_space<vmem>>, vector<16x32xf32>
    tpu.vector_store %arg5[%c0_14, %c0_15], %29 {strides = array<i32>} : memref<16x32xf32, #tpu.memory_space<vmem>>, vector<16x32xf32>,
    return
  }
  func.func @transform_0(%arg0: i32) -> (i32, i32) {
    %c0_i32 = arith.constant 0 : i32
    %c0_i32_0 = arith.constant 0 : i32
    return %arg0, %c0_i32 : i32, i32
  }
  func.func @transform_1(%arg0: i32) -> (i32, i32) {
    %c0_i32 = arith.constant 0 : i32
    %c0_i32_0 = arith.constant 0 : i32
    %c0_i32_1 = arith.constant 0 : i32
    return %c0_i32, %c0_i32_0 : i32, i32
  }
  func.func @transform_2(%arg0: i32) -> (i32, i32) {
    %c0_i32 = arith.constant 0 : i32
    %c0_i32_0 = arith.constant 0 : i32
    return %arg0, %c0_i32 : i32, i32
  }
  func.func @transform_3(%arg0: i32) -> (i32, i32) {
    %c0_i32 = arith.constant 0 : i32
    %c0_i32_0 = arith.constant 0 : i32
    %c0_i32_1 = arith.constant 0 : i32
    return %c0_i32, %c0_i32_0 : i32, i32
  }
  func.func @transform_4(%arg0: i32) -> (i32, i32) {
    %c0_i32 = arith.constant 0 : i32
    %c0_i32_0 = arith.constant 0 : i32
    return %arg0, %c0_i32 : i32, i32
  }
}

</mosaic_0001>

<bundles_post_ra>
// kernel: tpu_custom_call.1
= control target key start
LH: loop header
LB: loop body
LE: loop exit
PB: predicated region body
PF: predicated region fallthrough
CT: control target
= control target key end

     0   :  { %s276_s0 = inlined_call_operand.vmem [shape: f32[16,64], index: 0, kind: input, shape index: {}]   ;;  %s277_s1 = inlined_call_operand.vmem [shape: f32[64,32], index: 1, kind: input, shape index: {}]   ;;  %s278_s2 = inlined_call_operand.vmem [shape: f32[16,32], index: 2, kind: input, shape index: {}]   ;;  %s279_s3 = inlined_call_operand.vmem [shape: f32[3,32], index: 3, kind: input, shape index: {}]   ;;  %s280_s4 = inlined_call_operand.hbm [shape: f32[16,32], index: 4, kind: output, shape index: {}]  }
   0x1   :  { %v27_v0 = vld [vmem:[%s277_s1 + $0x38] sm:$0xff]  ;;  %v26_v1 = vld [vmem:[%s277_s1 + $0x30] sm:$0xff]  ;;  %v25_v2 = vld [vmem:[%s277_s1 + $0x28] sm:$0xff] }
   0x2   :  { %45 = vmatpush.msra.mxu0 %v27_v0  ;;  %146 = vmatpush.msra.mxu1 %v27_v0  ;;  %v24_v3 = vld [vmem:[%s277_s1 + $0x20] sm:$0xff] }
   0x4   :  { %46 = vmatpush.msra.mxu0 %v26_v1  ;;  %147 = vmatpush.msra.mxu1 %v26_v1 }
   0x5   :  { %9 = vsyncpa [#allocation3], 0  ;;  %v23_v4 = vld [vmem:[%s277_s1 + $0x18] sm:$0xff]  ;;  %v22_v5 = vld [vmem:[%s277_s1 + $0x10] sm:$0xff]  ;;  %vm30_vm0 = vcmask 523264   ;;  %vm64_vm1 = vcmask 261120  }
   0x6   :  { %47 = vmatpush.msra.mxu0 %v25_v2  ;;  %148 = vmatpush.msra.mxu1 %v25_v2  ;;  %v21_v6 = vld [vmem:[%s277_s1 + $0x8] sm:$0xff]  ;;  %v20_v7 = vld [vmem:[%s277_s1] sm:$0xff]  ;;  %v193_v21 = vmov 32.0   ;;  %s194_s16 = smov [#allocation2]   ;;  %s132_s20 = sshll.u32 %s280_s4, 4  ;;  %s133_s20 = int_to_ptr.hbm [resolvable:$true] %s132_s20 }
   0x7   :  { %v18_v8 = vld [vmem:[%s276_s0] sm:$0xff]  ;;  %v19_v9 = vld [vmem:[%s276_s0 + $0x8] sm:$0xff]  ;;  %161 = vrcp.f32 %v193_v21  ;;  %s130_s17 = sshll.u32 %s194_s16, 4  ;;  %s196_s21 = smov 8   ;;  %s131_s17 = int_to_ptr.vmem [resolvable:$true] %s130_s17 }
   0x8   :  { %48 = vmatpush.msra.mxu0 %v24_v3  ;;  %149 = vmatpush.msra.mxu1 %v24_v3  ;;  %v158_v10 = vld [vmem:[%s279_s3] ss:$0 sm:$0xff]  ;;  %v61_v17 = vld [vmem:[%s278_s2 + $0x8] sm:$0xff]  ;;  %v159_v52 = vld [vmem:[%s279_s3 + $0x1] ss:$0 sm:$0xff] }
   0x9   :  { %v60_v12 = vld [vmem:[%s278_s2] sm:$0xff] }
   0xa   :  { %49 = vmatpush.msra.mxu0 %v23_v4  ;;  %150 = vmatpush.msra.mxu1 %v23_v4  ;;  %v160_v56 = vld [vmem:[%s279_s3 + $0x2] ss:$0 sm:$0xff]  ;;  %s195_s3 = smov 128  }
   0xc   :  { %50 = vmatpush.msra.mxu0 %v22_v5  ;;  %151 = vmatpush.msra.mxu1 %v22_v5 }
   0xd   :  { %v162_v22 = vpop.eup %161 }
   0xe   :  { %51 = vmatpush.msra.mxu0 %v21_v6  ;;  %152 = vmatpush.msra.mxu1 %v21_v6  ;;  %v72_v23 = vmul.f32 32.0, %v162_v22  ;;  %vm76_vm2 = vweird.f32 %v162_v22 }
  0x10   :  { %52 = vmatpush.msra.mxu0 %v20_v7  ;;  %153 = vmatpush.msra.mxu1 %v20_v7  ;;  %v73_v24 = vsub.f32 1.0, %v72_v23 }
  0x11   :  { %144 = vmatmul.msk.f32.vlgmr.msra.gmra.mxu0 %vm30_vm0, %v18_v8  ;;  %145 = vmatmul.msk.f32.vlgmr.msra.gmra.mxu1 %vm30_vm0, %v19_v9 }
  0x12   :  { %v74_v25 = vmul.f32 %v162_v22, %v73_v24 }
  0x14   :  { %v75_v26 = vadd.f32 %v162_v22, %v74_v25 }
  0x16   :  { %v77_v27 = vsel %vm76_vm2, %v162_v22, %v75_v26 }
  0x8e   :  { %v54_v11 = vpop.f32.mrf.mxu0  ;;  %v57_v13 = vpop.f32.mrf.mxu1 }
  0x8f   :  { %v55_v14 = vadd.f32 %v158_v10, %v54_v11  ;;  %v58_v16 = vadd.f32 %v158_v10, %v57_v13 }
  0x91   :  { %v62_v15 = vadd.f32 %v60_v12, %v55_v14  ;;  %v63_v19 = vadd.f32 %v61_v17, %v58_v16 }
  0x93   :  { %v65_v18 = vsel %vm64_vm1, %v62_v15, 0.0  ;;  %v68_v20 = vsel %vm64_vm1, %v63_v19, 0.0 }
  0x94   :  { %66 = vadd.xlane.f32.xlu0 %v65_v18 }
  0x9c   :  { %69 = vadd.xlane.f32.xlu0 %v68_v20 }
 0x107   :  { %v67_v28 = vpop.xlane.xlu0 %66 }
 0x108   :  { %v78_v29 = vmul.f32 %v77_v27, %v67_v28 }
 0x10a   :  { %v80_v30 = vsub.f32 %v62_v15, %v78_v29 }
 0x10c   :  { %v82_v31 = vmul.f32 %v80_v30, %v80_v30 }
 0x10e   :  { %v84_v32 = vsel %vm64_vm1, %v82_v31, 0.0 }
 0x10f   :  { %85 = vadd.xlane.f32.xlu1 %v84_v32  ;;  %v70_v33 = vpop.xlane.xlu0 %69 }
 0x110   :  { %v79_v34 = vmul.f32 %v77_v27, %v70_v33 }
 0x112   :  { %v81_v35 = vsub.f32 %v63_v19, %v79_v34 }
 0x114   :  { %v83_v36 = vmul.f32 %v81_v35, %v81_v35 }
 0x116   :  { %v87_v37 = vsel %vm64_vm1, %v83_v36, 0.0 }
 0x117   :  { %88 = vadd.xlane.f32.xlu1 %v87_v37 }
 0x182   :  { %v86_v38 = vpop.xlane.xlu1 %85 }
 0x183   :  { %v90_v39 = vmul.f32 %v86_v38, %v77_v27 }
 0x185   :  { %v92_v40 = vadd.f32 1e-12, %v90_v39 }
 0x187   :  { %163 = vrsqrt.f32 %v92_v40  ;;  %vm100_vm4 = vweird.f32 %v92_v40 }
 0x18a   :  { %v89_v41 = vpop.xlane.xlu1 %88 }
 0x18b   :  { %v91_v42 = vmul.f32 %v89_v41, %v77_v27 }
 0x18d   :  { %v164_v43 = vpop.eup %163  ;;  %v93_v44 = vadd.f32 1e-12, %v91_v42 }
 0x18e   :  { %v95_v45 = vmul.f32 %v164_v43, %v92_v40  ;;  %vm101_vm3 = vweird.f32 %v164_v43 }
 0x18f   :  { %165 = vrsqrt.f32 %v93_v44  ;;  %vm102_vm5 = vmor %vm100_vm4, %vm101_vm3  ;;  %vm110_vm7 = vweird.f32 %v93_v44 }
 0x190   :  { %v96_v46 = vmul.f32 %v164_v43, %v95_v45 }
 0x192   :  { %v97_v47 = vmul.f32 0.5, %v96_v46 }
 0x194   :  { %v98_v48 = vsub.f32 1.5, %v97_v47 }
 0x195   :  { %v166_v49 = vpop.eup %165 }
 0x196   :  { %v99_v50 = vmul.f32 %v164_v43, %v98_v48  ;;  %v105_v51 = vmul.f32 %v166_v49, %v93_v44  ;;  %vm111_vm6 = vweird.f32 %v166_v49 }
 0x197   :  { %vm112_vm8 = vmor %vm110_vm7, %vm111_vm6 }
 0x198   :  { %v103_v53 = vsel %vm102_vm5, %v164_v43, %v99_v50  ;;  %v106_v54 = vmul.f32 %v166_v49, %v105_v51 }
 0x199   :  { %v114_v55 = vmul.f32 %v103_v53, %v80_v30 }
 0x19a   :  { %v107_v57 = vmul.f32 0.5, %v106_v54 }
 0x19b   :  { %v118_v58 = vmul.f32 %v159_v52, %v114_v55 }
 0x19c   :  { %v108_v59 = vsub.f32 1.5, %v107_v57 }
 0x19d   :  { %v122_v60 = vadd.f32 %v160_v56, %v118_v58 }
 0x19e   :  { %v109_v61 = vmul.f32 %v166_v49, %v108_v59 }
 0x19f   :  { %124 = vst.msk [vmem:[#allocation2] sm:$0xff] %vm64_vm1, %v122_v60 }
 0x1a0   :  { %v113_v62 = vsel %vm112_vm8, %v166_v49, %v109_v61 }
 0x1a1   :  { %v115_v63 = vmul.f32 %v113_v62, %v81_v35 }
 0x1a3   :  { %v119_v0 = vmul.f32 %v159_v52, %v115_v63 }
 0x1a5   :  { %v123_v1 = vadd.f32 %v160_v56, %v119_v0 }
 0x1a7   :  { %125 = vst.msk [vmem:[#allocation2 + $0x8] sm:$0xff] %vm64_vm1, %v123_v1 }
 0x1a8   :  { %138 = dma.vmem_to_hbm [thread:$0]  %s131_s17, 256, %s133_s20, [#allocation3], %s195_s3, %s195_s3, %s196_s21  }
 0x1a9   :  { %191 = dma.done.wait [#allocation3], 256  }
 0x1aa   :  { %192 = vsyncadd [#allocation3], 4294967040 }
 0x1ab   :  { %143 = vsyncpa [#allocation3], 1 }

</bundles_post_ra>
